<compile_context>
chip_gen: v7x
topology: tpu7x:2x2x1
jax: 0.10.0
libtpu: 0.0.40
codegen_flags: <defaults>
</compile_context>

<pallas_src>
import functools
import math

import jax
import jax.numpy as jnp
from jax.experimental import pallas as pl
from jax.experimental.pallas import tpu as pltpu


def _mha_kernel(x_ref, wqkv_ref, bqkv_ref, wo_ref, bo_ref, o_ref, *,
                num_heads, head_dim, mm_dtype):
    # x_ref:    (B, N, d)        block of B batch elements
    # wqkv_ref: (d, 3*H*dh)      fused [Q heads | K heads | V heads] weights
    # bqkv_ref: (1, 3*H*dh)      fused biases
    # wo_ref:   (H*dh, d), bo_ref: (1, d)
    # o_ref:    (B, N, d)
    B, N, d = x_ref.shape
    H, dh = num_heads, head_dim

    # Merge batch/seq (sublane-only reshape, cheap) -> (B*N, d)
    x2 = x_ref[...].reshape(B * N, d)

    # One fused QKV projection on the MXU + one wide bias add (f32 accumulate).
    qkv = jnp.dot(x2.astype(mm_dtype), wqkv_ref[...].astype(mm_dtype),
                  preferred_element_type=jnp.float32)
    qkv = qkv + bqkv_ref[...]                              # (B*N, 3*H*dh) f32

    wo = wo_ref[...]                                       # load WO once
    inv_sqrt_dh = 1.0 / math.sqrt(dh)

    out = jnp.zeros((B * N, d), jnp.float32)
    for h in range(H):                                     # H static -> unrolled
        q = (qkv[:, h * dh:(h + 1) * dh] * inv_sqrt_dh).reshape(B, N, dh)
        k = qkv[:, (H + h) * dh:(H + h + 1) * dh].reshape(B, N, dh)
        v = qkv[:, (2 * H + h) * dh:(2 * H + h + 1) * dh].reshape(B, N, dh)

        # Scores: contract head_dim directly (no materialized transpose).
        s = jnp.einsum('bqd,bkd->bqk', q.astype(mm_dtype), k.astype(mm_dtype),
                       preferred_element_type=jnp.float32)  # (B, N, N)

        # Numerically-stable softmax (elementwise math kept in f32).
        s_max = jnp.max(s, axis=-1, keepdims=True)
        p = jnp.exp(s - s_max)
        p = p * pl.reciprocal(jnp.sum(p, axis=-1, keepdims=True), approx=True)

        attn = jnp.einsum('bqk,bkd->bqd', p.astype(mm_dtype), v.astype(mm_dtype),
                          preferred_element_type=jnp.float32)  # (B, N, dh)

        # Accumulate into the WO slice for this head (no lane-dim concat).
        out = out + jnp.dot(attn.reshape(B * N, dh).astype(mm_dtype),
                            wo[h * dh:(h + 1) * dh, :].astype(mm_dtype),
                            preferred_element_type=jnp.float32)

    out = out + bo_ref[...]                                # single wide bias add
    o_ref[...] = out.reshape(B, N, d).astype(o_ref.dtype)


def multi_head_att(x, wq, bq, wk, bk, wv, bv, wo, bo, *,
                   use_bf16_matmul=False, batch_block=None):
    """x: (bs, N, d); wq/wk/wv: (H, d, dh) (x @ w layout); bq/bk/bv: (H, dh);
       wo: (d, d) (x @ w layout); bo: (d,). Returns (bs, N, d)."""
    bs, N, d = x.shape
    H, _, dh = wq.shape
    assert H * dh == d

    out_dtype = x.dtype
    mm_dtype = jnp.bfloat16 if use_bf16_matmul else jnp.float32

    # Pack per-head projection weights into one (d, 3*H*dh) slab:
    #   cols [0:d) -> Q heads, [d:2d) -> K heads, [2d:3d) -> V heads,
    #   head h occupying cols h*dh:(h+1)*dh inside each section.
    w_qkv = jnp.concatenate(
        [jnp.transpose(wq, (1, 0, 2)).reshape(d, H * dh),
         jnp.transpose(wk, (1, 0, 2)).reshape(d, H * dh),
         jnp.transpose(wv, (1, 0, 2)).reshape(d, H * dh)], axis=1)
    b_qkv = jnp.concatenate(
        [bq.reshape(H * dh), bk.reshape(H * dh), bv.reshape(H * dh)]).reshape(1, 3 * d)
    bo2 = bo.reshape(1, d)

    if use_bf16_matmul:
        # Halve DMA / VMEM bytes for activations and weights; accumulation
        # stays f32 via preferred_element_type inside the kernel.
        x = x.astype(jnp.bfloat16)
        w_qkv = w_qkv.astype(jnp.bfloat16)
        wo = wo.astype(jnp.bfloat16)

    # Batch-block several batch elements per grid step (amortize per-step
    # overhead), but keep >=2 grid steps when possible so both v7x TCs get work.
    if batch_block is None:
        B = bs // 2 if (bs >= 2 and bs % 2 == 0) else 1
    else:
        B = batch_block
    assert bs % B == 0, "batch_block must divide batch size"
    grid = (bs // B,)

    kernel = functools.partial(_mha_kernel, num_heads=H, head_dim=dh,
                               mm_dtype=mm_dtype)

    return pl.pallas_call(
        kernel,
        out_shape=jax.ShapeDtypeStruct((bs, N, d), out_dtype),
        grid_spec=pltpu.PrefetchScalarGridSpec(
            num_scalar_prefetch=0,
            grid=grid,
            in_specs=[
                pl.BlockSpec((B, N, d), lambda b: (b, 0, 0)),   # x block
                pl.BlockSpec((d, 3 * d), lambda b: (0, 0)),     # fused W_qkv
                pl.BlockSpec((1, 3 * d), lambda b: (0, 0)),     # fused b_qkv
                pl.BlockSpec((d, d), lambda b: (0, 0)),         # WO
                pl.BlockSpec((1, d), lambda b: (0, 0)),         # bo
            ],
            out_specs=pl.BlockSpec((B, N, d), lambda b: (b, 0, 0)),
        ),
        compiler_params=pltpu.CompilerParams(
            dimension_semantics=("parallel",),
            vmem_limit_bytes=32 * 1024 * 1024),
    )(x, w_qkv, b_qkv, wo, bo2)


def _reference(x, wq, bq, wk, bk, wv, bv, wo, bo):
    """Pure-JAX reference mirroring the PyTorch forward."""
    H, d, dh = wq.shape
    outs = []
    for h in range(H):
        q = x @ wq[h] + bq[h]
        k = x @ wk[h] + bk[h]
        v = x @ wv[h] + bv[h]
        s = jnp.einsum('bnd,bmd->bnm', q, k) / jnp.sqrt(jnp.float32(dh))
        p = jax.nn.softmax(s, axis=-1)
        outs.append(jnp.einsum('bnm,bmd->bnd', p, v))
    concat = jnp.concatenate(outs, axis=-1)
    return concat @ wo + bo


if __name__ == "__main__":
    bs, N, d, H = 2, 16, 32, 4          # inp_channels=32, num_heads=4 -> dh=8
    dh = d // H

    key = jax.random.PRNGKey(0)
    ks = jax.random.split(key, 9)

    # PyTorch nn.Linear-style init: U(-1/sqrt(fan_in), 1/sqrt(fan_in))
    def lin_init(k, fan_in, shape):
        bound = 1.0 / math.sqrt(fan_in)
        return jax.random.uniform(k, shape, jnp.float32, -bound, bound)

    x  = jax.random.normal(ks[0], (bs, N, d), jnp.float32)
    wq = lin_init(ks[1], d, (H, d, dh)); bq = lin_init(ks[2], d, (H, dh))
    wk = lin_init(ks[3], d, (H, d, dh)); bk = lin_init(ks[4], d, (H, dh))
    wv = lin_init(ks[5], d, (H, d, dh)); bv = lin_init(ks[6], d, (H, dh))
    wo = lin_init(ks[7], d, (d, d));     bo = lin_init(ks[8], d, (d,))

    ref = _reference(x, wq, bq, wk, bk, wv, bv, wo, bo)

    # f32 MXU operands (exact path; approx reciprocal -> slightly looser tol).
    out = jax.block_until_ready(multi_head_att(x, wq, bq, wk, bk, wv, bv, wo, bo))
    assert out.shape == (bs, N, d)
    assert jnp.allclose(out, ref, atol=2e-3, rtol=2e-3), "f32 path mismatch vs JAX reference"

    # bf16 MXU operands with f32 accumulation (v6e / v7x fast path).
    out_bf16 = jax.block_until_ready(
        multi_head_att(x, wq, bq, wk, bk, wv, bv, wo, bo, use_bf16_matmul=True))
    assert out_bf16.shape == (bs, N, d)
    assert jnp.allclose(out_bf16, ref, atol=6e-2, rtol=6e-2), "bf16 path mismatch vs JAX reference"

    print("KERNEL_OK")
</pallas_src>

<mosaic_0001>
module attributes {stable_mosaic.version = 11 : i64} {
  func.func @_mha_kernel(%arg0: i32, %arg1: memref<1x16x32xf32, #tpu.memory_space<vmem>>, %arg2: memref<32x96xf32, #tpu.memory_space<vmem>>, %arg3: memref<1x96xf32, #tpu.memory_space<vmem>>, %arg4: memref<32x32xf32, #tpu.memory_space<vmem>>, %arg5: memref<1x32xf32, #tpu.memory_space<vmem>>, %arg6: memref<1x16x32xf32, #tpu.memory_space<vmem>>) attributes {dimension_semantics = [#tpu.dimension_semantics<parallel>], iteration_bounds = array<i64: 2>, scalar_prefetch = 0 : i64, scratch_operands = 0 : i64, tpu.core_type = #tpu.core_type<tc>, window_params = [{transform_indices = @transform_0, window_bounds = array<i64: 1, 16, 32>}, {pipeline_mode = #tpu.pipeline_mode<synchronous>, transform_indices = @transform_1, window_bounds = array<i64: 32, 96>}, {pipeline_mode = #tpu.pipeline_mode<synchronous>, transform_indices = @transform_2, window_bounds = array<i64: 1, 96>}, {pipeline_mode = #tpu.pipeline_mode<synchronous>, transform_indices = @transform_3, window_bounds = array<i64: 32, 32>}, {pipeline_mode = #tpu.pipeline_mode<synchronous>, transform_indices = @transform_4, window_bounds = array<i64: 1, 32>}, {transform_indices = @transform_5, window_bounds = array<i64: 1, 16, 32>}]} {
    %c0 = arith.constant 0 : index
    %c0_0 = arith.constant 0 : index
    %c0_1 = arith.constant 0 : index
    %0 = vector.load %arg1[%c0, %c0_0, %c0_1] : memref<1x16x32xf32, #tpu.memory_space<vmem>>, vector<1x16x32xf32>
    %1 = vector.shape_cast %0 : vector<1x16x32xf32> to vector<16x32xf32>
    %c0_2 = arith.constant 0 : index
    %c0_3 = arith.constant 0 : index
    %2 = vector.load %arg2[%c0_2, %c0_3] : memref<32x96xf32, #tpu.memory_space<vmem>>, vector<32x96xf32>
    %cst = arith.constant dense<0.000000e+00> : vector<16x96xf32>
    %3 = tpu.matmul %1, %2, %cst {dimension_numbers = #tpu.dot_dimension_numbers<[1], [0], [0], [1], [0, 0, 1, 1], [], []>} : vector<16x32xf32>, vector<32x96xf32>, vector<16x96xf32> -> vector<16x96xf32>
    %c0_4 = arith.constant 0 : index
    %c0_5 = arith.constant 0 : index
    %4 = vector.load %arg3[%c0_4, %c0_5] : memref<1x96xf32, #tpu.memory_space<vmem>>, vector<1x96xf32>
    %5 = vector.broadcast %4 : vector<1x96xf32> to vector<16x96xf32>
    %6 = arith.addf %3, %5 : vector<16x96xf32>
    %c0_6 = arith.constant 0 : index
    %c0_7 = arith.constant 0 : index
    %7 = vector.load %arg4[%c0_6, %c0_7] : memref<32x32xf32, #tpu.memory_space<vmem>>, vector<32x32xf32>
    %cst_8 = arith.constant 0.000000e+00 : f32
    %8 = vector.broadcast %cst_8 : f32 to vector<16x32xf32>
    %9 = vector.extract_strided_slice %6 {offsets = [0, 0], sizes = [16, 8], strides = [1, 1]} : vector<16x96xf32> to vector<16x8xf32>
    %cst_9 = arith.constant 0.353553385 : f32
    %10 = vector.broadcast %cst_9 : f32 to vector<16x8xf32>
    %11 = arith.mulf %9, %10 : vector<16x8xf32>
    %12 = vector.shape_cast %11 : vector<16x8xf32> to vector<1x16x8xf32>
    %13 = vector.extract_strided_slice %6 {offsets = [0, 32], sizes = [16, 8], strides = [1, 1]} : vector<16x96xf32> to vector<16x8xf32>
    %14 = vector.shape_cast %13 : vector<16x8xf32> to vector<1x16x8xf32>
    %15 = vector.extract_strided_slice %6 {offsets = [0, 64], sizes = [16, 8], strides = [1, 1]} : vector<16x96xf32> to vector<16x8xf32>
    %16 = vector.shape_cast %15 : vector<16x8xf32> to vector<1x16x8xf32>
    "tpu.trace_start"() <{level = 10 : i32, message = "bqd,bkd->bqk"}> : () -> ()
    %cst_10 = arith.constant dense<0.000000e+00> : vector<1x16x16xf32>
    %17 = tpu.matmul %12, %14, %cst_10 {dimension_numbers = #tpu.dot_dimension_numbers<[2], [2], [1], [1], [0, 0, 0, 1, 1, 1], [0], [0]>} : vector<1x16x8xf32>, vector<1x16x8xf32>, vector<1x16x16xf32> -> vector<1x16x16xf32>
    "tpu.trace_stop"() : () -> ()
    %cst_11 = arith.constant dense<0xFF800000> : vector<1x16xf32>
    %18 = vector.multi_reduction <maximumf>, %17, %cst_11 [2] : vector<1x16x16xf32> to vector<1x16xf32>
    %19 = vector.shape_cast %18 : vector<1x16xf32> to vector<1x16x1xf32>
    %20 = vector.broadcast %19 : vector<1x16x1xf32> to vector<1x16x16xf32>
    %21 = arith.subf %17, %20 : vector<1x16x16xf32>
    %22 = math.exp %21 : vector<1x16x16xf32>
    %cst_12 = arith.constant dense<0.000000e+00> : vector<1x16xf32>
    %23 = vector.multi_reduction <add>, %22, %cst_12 [2] : vector<1x16x16xf32> to vector<1x16xf32>
    %24 = vector.shape_cast %23 : vector<1x16xf32> to vector<1x16x1xf32>
    %25 = tpu.reciprocal %24 {approx = true} : vector<1x16x1xf32> -> vector<1x16x1xf32>
    %26 = vector.broadcast %25 : vector<1x16x1xf32> to vector<1x16x16xf32>
    %27 = arith.mulf %22, %26 : vector<1x16x16xf32>
    "tpu.trace_start"() <{level = 10 : i32, message = "bqk,bkd->bqd"}> : () -> ()
    %cst_13 = arith.constant dense<0.000000e+00> : vector<1x16x8xf32>
    %28 = tpu.matmul %27, %16, %cst_13 {dimension_numbers = #tpu.dot_dimension_numbers<[2], [1], [1], [2], [0, 0, 0, 1, 1, 2], [0], [0]>} : vector<1x16x16xf32>, vector<1x16x8xf32>, vector<1x16x8xf32> -> vector<1x16x8xf32>
    "tpu.trace_stop"() : () -> ()
    %29 = vector.shape_cast %28 : vector<1x16x8xf32> to vector<16x8xf32>
    %30 = vector.extract_strided_slice %7 {offsets = [0, 0], sizes = [8, 32], strides = [1, 1]} : vector<32x32xf32> to vector<8x32xf32>
    %cst_14 = arith.constant dense<0.000000e+00> : vector<16x32xf32>
    %31 = tpu.matmul %29, %30, %cst_14 {dimension_numbers = #tpu.dot_dimension_numbers<[1], [0], [0], [1], [0, 0, 1, 1], [], []>} : vector<16x8xf32>, vector<8x32xf32>, vector<16x32xf32> -> vector<16x32xf32>
    %32 = arith.addf %8, %31 : vector<16x32xf32>
    %33 = vector.extract_strided_slice %6 {offsets = [0, 8], sizes = [16, 8], strides = [1, 1]} : vector<16x96xf32> to vector<16x8xf32>
    %cst_15 = arith.constant 0.353553385 : f32
    %34 = vector.broadcast %cst_15 : f32 to vector<16x8xf32>
    %35 = arith.mulf %33, %34 : vector<16x8xf32>
    %36 = vector.shape_cast %35 : vector<16x8xf32> to vector<1x16x8xf32>
    %37 = vector.extract_strided_slice %6 {offsets = [0, 40], sizes = [16, 8], strides = [1, 1]} : vector<16x96xf32> to vector<16x8xf32>
    %38 = vector.shape_cast %37 : vector<16x8xf32> to vector<1x16x8xf32>
    %39 = vector.extract_strided_slice %6 {offsets = [0, 72], sizes = [16, 8], strides = [1, 1]} : vector<16x96xf32> to vector<16x8xf32>
    %40 = vector.shape_cast %39 : vector<16x8xf32> to vector<1x16x8xf32>
    "tpu.trace_start"() <{level = 10 : i32, message = "bqd,bkd->bqk"}> : () -> ()
    %cst_16 = arith.constant dense<0.000000e+00> : vector<1x16x16xf32>
    %41 = tpu.matmul %36, %38, %cst_16 {dimension_numbers = #tpu.dot_dimension_numbers<[2], [2], [1], [1], [0, 0, 0, 1, 1, 1], [0], [0]>} : vector<1x16x8xf32>, vector<1x16x8xf32>, vector<1x16x16xf32> -> vector<1x16x16xf32>
    "tpu.trace_stop"() : () -> ()
    %cst_17 = arith.constant dense<0xFF800000> : vector<1x16xf32>
    %42 = vector.multi_reduction <maximumf>, %41, %cst_17 [2] : vector<1x16x16xf32> to vector<1x16xf32>
    %43 = vector.shape_cast %42 : vector<1x16xf32> to vector<1x16x1xf32>
    %44 = vector.broadcast %43 : vector<1x16x1xf32> to vector<1x16x16xf32>
    %45 = arith.subf %41, %44 : vector<1x16x16xf32>
    %46 = math.exp %45 : vector<1x16x16xf32>
    %cst_18 = arith.constant dense<0.000000e+00> : vector<1x16xf32>
    %47 = vector.multi_reduction <add>, %46, %cst_18 [2] : vector<1x16x16xf32> to vector<1x16xf32>
    %48 = vector.shape_cast %47 : vector<1x16xf32> to vector<1x16x1xf32>
    %49 = tpu.reciprocal %48 {approx = true} : vector<1x16x1xf32> -> vector<1x16x1xf32>
    %50 = vector.broadcast %49 : vector<1x16x1xf32> to vector<1x16x16xf32>
    %51 = arith.mulf %46, %50 : vector<1x16x16xf32>
    "tpu.trace_start"() <{level = 10 : i32, message = "bqk,bkd->bqd"}> : () -> ()
    %cst_19 = arith.constant dense<0.000000e+00> : vector<1x16x8xf32>
    %52 = tpu.matmul %51, %40, %cst_19 {dimension_numbers = #tpu.dot_dimension_numbers<[2], [1], [1], [2], [0, 0, 0, 1, 1, 2], [0], [0]>} : vector<1x16x16xf32>, vector<1x16x8xf32>, vector<1x16x8xf32> -> vector<1x16x8xf32>
    "tpu.trace_stop"() : () -> ()
    %53 = vector.shape_cast %52 : vector<1x16x8xf32> to vector<16x8xf32>
    %54 = vector.extract_strided_slice %7 {offsets = [8, 0], sizes = [8, 32], strides = [1, 1]} : vector<32x32xf32> to vector<8x32xf32>
    %cst_20 = arith.constant dense<0.000000e+00> : vector<16x32xf32>
    %55 = tpu.matmul %53, %54, %cst_20 {dimension_numbers = #tpu.dot_dimension_numbers<[1], [0], [0], [1], [0, 0, 1, 1], [], []>} : vector<16x8xf32>, vector<8x32xf32>, vector<16x32xf32> -> vector<16x32xf32>
    %56 = arith.addf %32, %55 : vector<16x32xf32>
    %57 = vector.extract_strided_slice %6 {offsets = [0, 16], sizes = [16, 8], strides = [1, 1]} : vector<16x96xf32> to vector<16x8xf32>
    %cst_21 = arith.constant 0.353553385 : f32
    %58 = vector.broadcast %cst_21 : f32 to vector<16x8xf32>
    %59 = arith.mulf %57, %58 : vector<16x8xf32>
    %60 = vector.shape_cast %59 : vector<16x8xf32> to vector<1x16x8xf32>
    %61 = vector.extract_strided_slice %6 {offsets = [0, 48], sizes = [16, 8], strides = [1, 1]} : vector<16x96xf32> to vector<16x8xf32>
    %62 = vector.shape_cast %61 : vector<16x8xf32> to vector<1x16x8xf32>
    %63 = vector.extract_strided_slice %6 {offsets = [0, 80], sizes = [16, 8], strides = [1, 1]} : vector<16x96xf32> to vector<16x8xf32>
    %64 = vector.shape_cast %63 : vector<16x8xf32> to vector<1x16x8xf32>
    "tpu.trace_start"() <{level = 10 : i32, message = "bqd,bkd->bqk"}> : () -> ()
    %cst_22 = arith.constant dense<0.000000e+00> : vector<1x16x16xf32>
    %65 = tpu.matmul %60, %62, %cst_22 {dimension_numbers = #tpu.dot_dimension_numbers<[2], [2], [1], [1], [0, 0, 0, 1, 1, 1], [0], [0]>} : vector<1x16x8xf32>, vector<1x16x8xf32>, vector<1x16x16xf32> -> vector<1x16x16xf32>
    "tpu.trace_stop"() : () -> ()
    %cst_23 = arith.constant dense<0xFF800000> : vector<1x16xf32>
    %66 = vector.multi_reduction <maximumf>, %65, %cst_23 [2] : vector<1x16x16xf32> to vector<1x16xf32>
    %67 = vector.shape_cast %66 : vector<1x16xf32> to vector<1x16x1xf32>
    %68 = vector.broadcast %67 : vector<1x16x1xf32> to vector<1x16x16xf32>
    %69 = arith.subf %65, %68 : vector<1x16x16xf32>
    %70 = math.exp %69 : vector<1x16x16xf32>
    %cst_24 = arith.constant dense<0.000000e+00> : vector<1x16xf32>
    %71 = vector.multi_reduction <add>, %70, %cst_24 [2] : vector<1x16x16xf32> to vector<1x16xf32>
    %72 = vector.shape_cast %71 : vector<1x16xf32> to vector<1x16x1xf32>
    %73 = tpu.reciprocal %72 {approx = true} : vector<1x16x1xf32> -> vector<1x16x1xf32>
    %74 = vector.broadcast %73 : vector<1x16x1xf32> to vector<1x16x16xf32>
    %75 = arith.mulf %70, %74 : vector<1x16x16xf32>
    "tpu.trace_start"() <{level = 10 : i32, message = "bqk,bkd->bqd"}> : () -> ()
    %cst_25 = arith.constant dense<0.000000e+00> : vector<1x16x8xf32>
    %76 = tpu.matmul %75, %64, %cst_25 {dimension_numbers = #tpu.dot_dimension_numbers<[2], [1], [1], [2], [0, 0, 0, 1, 1, 2], [0], [0]>} : vector<1x16x16xf32>, vector<1x16x8xf32>, vector<1x16x8xf32> -> vector<1x16x8xf32>
    "tpu.trace_stop"() : () -> ()
    %77 = vector.shape_cast %76 : vector<1x16x8xf32> to vector<16x8xf32>
    %78 = vector.extract_strided_slice %7 {offsets = [16, 0], sizes = [8, 32], strides = [1, 1]} : vector<32x32xf32> to vector<8x32xf32>
    %cst_26 = arith.constant dense<0.000000e+00> : vector<16x32xf32>
    %79 = tpu.matmul %77, %78, %cst_26 {dimension_numbers = #tpu.dot_dimension_numbers<[1], [0], [0], [1], [0, 0, 1, 1], [], []>} : vector<16x8xf32>, vector<8x32xf32>, vector<16x32xf32> -> vector<16x32xf32>
    %80 = arith.addf %56, %79 : vector<16x32xf32>
    %81 = vector.extract_strided_slice %6 {offsets = [0, 24], sizes = [16, 8], strides = [1, 1]} : vector<16x96xf32> to vector<16x8xf32>
    %cst_27 = arith.constant 0.353553385 : f32
    %82 = vector.broadcast %cst_27 : f32 to vector<16x8xf32>
    %83 = arith.mulf %81, %82 : vector<16x8xf32>
    %84 = vector.shape_cast %83 : vector<16x8xf32> to vector<1x16x8xf32>
    %85 = vector.extract_strided_slice %6 {offsets = [0, 56], sizes = [16, 8], strides = [1, 1]} : vector<16x96xf32> to vector<16x8xf32>
    %86 = vector.shape_cast %85 : vector<16x8xf32> to vector<1x16x8xf32>
    %87 = vector.extract_strided_slice %6 {offsets = [0, 88], sizes = [16, 8], strides = [1, 1]} : vector<16x96xf32> to vector<16x8xf32>
    %88 = vector.shape_cast %87 : vector<16x8xf32> to vector<1x16x8xf32>
    "tpu.trace_start"() <{level = 10 : i32, message = "bqd,bkd->bqk"}> : () -> ()
    %cst_28 = arith.constant dense<0.000000e+00> : vector<1x16x16xf32>
    %89 = tpu.matmul %84, %86, %cst_28 {dimension_numbers = #tpu.dot_dimension_numbers<[2], [2], [1], [1], [0, 0, 0, 1, 1, 1], [0], [0]>} : vector<1x16x8xf32>, vector<1x16x8xf32>, vector<1x16x16xf32> -> vector<1x16x16xf32>
    "tpu.trace_stop"() : () -> ()
    %cst_29 = arith.constant dense<0xFF800000> : vector<1x16xf32>
    %90 = vector.multi_reduction <maximumf>, %89, %cst_29 [2] : vector<1x16x16xf32> to vector<1x16xf32>
    %91 = vector.shape_cast %90 : vector<1x16xf32> to vector<1x16x1xf32>
    %92 = vector.broadcast %91 : vector<1x16x1xf32> to vector<1x16x16xf32>
    %93 = arith.subf %89, %92 : vector<1x16x16xf32>
    %94 = math.exp %93 : vector<1x16x16xf32>
    %cst_30 = arith.constant dense<0.000000e+00> : vector<1x16xf32>
    %95 = vector.multi_reduction <add>, %94, %cst_30 [2] : vector<1x16x16xf32> to vector<1x16xf32>
    %96 = vector.shape_cast %95 : vector<1x16xf32> to vector<1x16x1xf32>
    %97 = tpu.reciprocal %96 {approx = true} : vector<1x16x1xf32> -> vector<1x16x1xf32>
    %98 = vector.broadcast %97 : vector<1x16x1xf32> to vector<1x16x16xf32>
    %99 = arith.mulf %94, %98 : vector<1x16x16xf32>
    "tpu.trace_start"() <{level = 10 : i32, message = "bqk,bkd->bqd"}> : () -> ()
    %cst_31 = arith.constant dense<0.000000e+00> : vector<1x16x8xf32>
    %100 = tpu.matmul %99, %88, %cst_31 {dimension_numbers = #tpu.dot_dimension_numbers<[2], [1], [1], [2], [0, 0, 0, 1, 1, 2], [0], [0]>} : vector<1x16x16xf32>, vector<1x16x8xf32>, vector<1x16x8xf32> -> vector<1x16x8xf32>
    "tpu.trace_stop"() : () -> ()
    %101 = vector.shape_cast %100 : vector<1x16x8xf32> to vector<16x8xf32>
    %102 = vector.extract_strided_slice %7 {offsets = [24, 0], sizes = [8, 32], strides = [1, 1]} : vector<32x32xf32> to vector<8x32xf32>
    %cst_32 = arith.constant dense<0.000000e+00> : vector<16x32xf32>
    %103 = tpu.matmul %101, %102, %cst_32 {dimension_numbers = #tpu.dot_dimension_numbers<[1], [0], [0], [1], [0, 0, 1, 1], [], []>} : vector<16x8xf32>, vector<8x32xf32>, vector<16x32xf32> -> vector<16x32xf32>
    %104 = arith.addf %80, %103 : vector<16x32xf32>
    %c0_33 = arith.constant 0 : index
    %c0_34 = arith.constant 0 : index
    %105 = vector.load %arg5[%c0_33, %c0_34] : memref<1x32xf32, #tpu.memory_space<vmem>>, vector<1x32xf32>
    %106 = vector.broadcast %105 : vector<1x32xf32> to vector<16x32xf32>
    %107 = arith.addf %104, %106 : vector<16x32xf32>
    %108 = vector.shape_cast %107 : vector<16x32xf32> to vector<1x16x32xf32>
    %c0_35 = arith.constant 0 : index
    %c0_36 = arith.constant 0 : index
    %c0_37 = arith.constant 0 : index
    %109 = vector.load %arg6[%c0_35, %c0_36, %c0_37] : memref<1x16x32xf32, #tpu.memory_space<vmem>>, vector<1x16x32xf32>
    tpu.vector_store %arg6[%c0_35, %c0_36, %c0_37], %108 {strides = array<i32>} : memref<1x16x32xf32, #tpu.memory_space<vmem>>, vector<1x16x32xf32>,
    return
  }
  func.func @transform_0(%arg0: i32) -> (i32, i32, i32) {
    %c0_i32 = arith.constant 0 : i32
    %c0_i32_0 = arith.constant 0 : i32
    %c0_i32_1 = arith.constant 0 : i32
    return %arg0, %c0_i32, %c0_i32_0 : i32, i32, i32
  }
  func.func @transform_1(%arg0: i32) -> (i32, i32) {
    %c0_i32 = arith.constant 0 : i32
    %c0_i32_0 = arith.constant 0 : i32
    %c0_i32_1 = arith.constant 0 : i32
    return %c0_i32, %c0_i32_0 : i32, i32
  }
  func.func @transform_2(%arg0: i32) -> (i32, i32) {
    %c0_i32 = arith.constant 0 : i32
    %c0_i32_0 = arith.constant 0 : i32
    %c0_i32_1 = arith.constant 0 : i32
    return %c0_i32, %c0_i32_0 : i32, i32
  }
  func.func @transform_3(%arg0: i32) -> (i32, i32) {
    %c0_i32 = arith.constant 0 : i32
    %c0_i32_0 = arith.constant 0 : i32
    %c0_i32_1 = arith.constant 0 : i32
    return %c0_i32, %c0_i32_0 : i32, i32
  }
  func.func @transform_4(%arg0: i32) -> (i32, i32) {
    %c0_i32 = arith.constant 0 : i32
    %c0_i32_0 = arith.constant 0 : i32
    %c0_i32_1 = arith.constant 0 : i32
    return %c0_i32, %c0_i32_0 : i32, i32
  }
  func.func @transform_5(%arg0: i32) -> (i32, i32, i32) {
    %c0_i32 = arith.constant 0 : i32
    %c0_i32_0 = arith.constant 0 : i32
    %c0_i32_1 = arith.constant 0 : i32
    return %arg0, %c0_i32, %c0_i32_0 : i32, i32, i32
  }
}

</mosaic_0001>

<bundles_post_ra>
// kernel: tpu_custom_call.1
= control target key start
LH: loop header
LB: loop body
LE: loop exit
PB: predicated region body
PF: predicated region fallthrough
CT: control target
= control target key end

     0   :  { %10 = vsyncpa [#allocation3], 0  ;;  %s2579_s0 = inlined_call_operand.hbm [shape: f32[2,16,32], index: 0, kind: input, shape index: {}]   ;;  %s2580_s1 = inlined_call_operand.hbm [shape: f32[32,96], index: 1, kind: input, shape index: {}]   ;;  %s2581_s2 = inlined_call_operand.vmem [shape: f32[1,96], index: 2, kind: input, shape index: {}]   ;;  %s2582_s3 = inlined_call_operand.hbm [shape: f32[32,32], index: 3, kind: input, shape index: {}]   ;;  %s2583_s4 = inlined_call_operand.vmem [shape: f32[1,32], index: 4, kind: input, shape index: {}]   ;;  %s2584_s5 = inlined_call_operand.hbm [shape: f32[2,16,32], index: 5, kind: output, shape index: {}]  }
   0x1   :  { %12 = vsyncpa [#allocation3 + $0x1], 0 }
   0x2   :  { %13 = vsyncpa [#allocation6], 0 }
   0x3   :  { %14 = vsyncpa [#allocation4], 0 }
   0x4   :  { %16 = vsyncpa [#allocation4 + $0x1], 0  ;;  %s2228_s18 = smov 0   ;;  %s2230_s19 = smov 0  }
   0x5   :  { %s2232_s20 = smov 0   ;;  %s2234_s21 = smov 0  }
   0x6 LB: > { %s2249_s22 = sadd.s32 4294967295, %s2177_s21   ;;  %s1620_s23 = sadd.s32 4294967294, %s2177_s21   ;;  %s2177_s21 = sphi %s2234_s21, %s2606_s21   ;;  %s2173_s20 = sphi %s2232_s20, %s2605_s20   ;;  %s2169_s19 = sphi %s2230_s19, %s2604_s19   ;;  %s2165_s18 = sphi %s2228_s18, %s2603_s18  }
   0x7   : > { %p42_p0 = scmp.ne.s32.totalorder %s2169_s19, %s2165_s18  ;;  %p2585_p1 = scmp.eq.s32.totalorder %s2249_s22, 0 }
   0x8   : > { %p156_p3 = scmp.eq.s32.totalorder %s1620_s23, 1  ;;  %p1621_p5 = scmp.ge.s32.totalorder %s2177_s21, 1 }
   0x9   : > { %p2258_p4 = por %p2585_p1, %p42_p0  ;;  %p163_p7 = scmp.lt.s32.totalorder %s2177_s21, 3 }
   0xa   : > { %p2263_p6 = por %p156_p3, %p42_p0  ;;  %s2179_s27 = smov [#allocation5]  }
   0xb   : > { %s2588_s24 = scalar_select %p2258_p4, 1, 0 }
   0xc   : > { %s2589_s25 = scalar_select %p2263_p6, 1, 0 }
   0xd   : > { %p2268_p8 = pnand %p1621_p5, %p163_p7  ;;  %s175_s28 = sshll.u32 %s2179_s27, 4  ;;  %s2272_s28 = int_to_ptr.vmem [resolvable:$true] %s175_s28 }
   0xe   : > { %s2180_s30 = smov [#allocation7]   ;;  %s2021_s9 = scalar_lea.hbm %s2580_s1, 512 }
   0xf   : > { %p1879_p9 = pneg %p2268_p8  ;;  %s191_s6 = sshll.u32 %s2180_s30, 4  ;;  %s2283_s6 = int_to_ptr.vmem [resolvable:$true] %s191_s6 }
  0x10   : > { %p2022_p12 = scmp.ne.s32.totalorder %s2580_s1, %s2021_s9  ;;  %p2028_p5 = scmp.lt.u32.totalorder %s2021_s9, %s2580_s1 }
  0x11   : > { %p2279_p11 = pnand %p1879_p9, %p2585_p1 }
  0x13   : > { %p2023_p13 = pneg %p2279_p11 }
  0x15   : > { %p2024_p0 = pnand %p2023_p13, %p2022_p12 }
  0x17   : > { %p2025_p3 = pneg %p2024_p0 }
  0x19   : > { %p2030_p7 = pnand %p2028_p5, %p2025_p3 }
  0x1b   : > { %2033 = shalt.err (!%p2030_p7)
}
  0x1c   : > { %s2034_s14 = scalar_lea.vmem %s2272_s28, 512  ;;  %p2042_p2 = scmp.lt.s32.totalorder %s2272_s28, %s2272_s28 }
  0x1d   : > { %p2035_p9 = scmp.ne.s32.totalorder %s2272_s28, %s2034_s14  ;;  %p2043_p12 = scmp.lt.s32.totalorder %s2034_s14, %s2034_s14 }
  0x1f   : > { %p2037_p10 = pnand %p2035_p9, %p2023_p13  ;;  %p2044_p0 = por %p2043_p12, %p2042_p2 }
  0x21   : > { %p2038_p1 = pneg %p2037_p10 }
  0x23   : > { %p2045_p6 = pnand %p2044_p0, %p2038_p1 }
  0x25   : > { %2048 = shalt.err (!%p2045_p6)
}
  0x26   : > { %s2181_s15 = smov 128   ;;  %s2182_s16 = smov 8  }
  0x27   : > { %1882 = dma.hbm_to_vmem [thread:$0]  (!%p2279_p11), %s2580_s1, 512, %s2272_s28, [#allocation6], %s2181_s15, %s2181_s15, %s2182_s16  }
  0x28   : > { %s2049_s7 = scalar_lea.hbm %s2582_s3, 512 }
  0x29   : > { %p2050_p1 = scmp.ne.s32.totalorder %s2582_s3, %s2049_s7  ;;  %p2056_p10 = scmp.lt.u32.totalorder %s2049_s7, %s2582_s3 }
  0x2b   : > { %p2052_p2 = pnand %p2050_p1, %p2023_p13 }
  0x2d   : > { %p2053_p6 = pneg %p2052_p2 }
  0x2f   : > { %p2058_p3 = pnand %p2056_p10, %p2053_p6 }
  0x31   : > { %2061 = shalt.err (!%p2058_p3)
}
  0x32   : > { %s2062_s28 = scalar_lea.vmem %s2283_s6, 512  ;;  %p2070_p12 = scmp.lt.s32.totalorder %s2283_s6, %s2283_s6 }
  0x33   : > { %p2063_p5 = scmp.ne.s32.totalorder %s2283_s6, %s2062_s28  ;;  %p2071_p0 = scmp.lt.s32.totalorder %s2062_s28, %s2062_s28 }
  0x35   : > { %p2065_p7 = pnand %p2063_p5, %p2023_p13  ;;  %p2072_p1 = por %p2071_p0, %p2070_p12 }
  0x37   : > { %p2066_p9 = pneg %p2065_p7 }
  0x39   : > { %p2073_p2 = pnand %p2072_p1, %p2066_p9 }
  0x3b   : > { %2076 = shalt.err (!%p2073_p2)
}
  0x3c   : > { %1885 = dma.hbm_to_vmem [thread:$0]  (!%p2279_p11), %s2582_s3, 512, %s2283_s6, [#allocation6], %s2181_s15, %s2181_s15, %s2182_s16  }
  0x3d   : > { %s2344_s29 = sadd.s32 1, %s2177_s21   ;;  %s29_s14 = sadd.s32 1, %s2173_s20 }
  0x3e   : > { %s26_s17 = ssub.s32 %s2177_s21, %s2344_s29  ;;  %p36_p13 = scmp.ne.s32.totalorder %s2173_s20, %s2169_s19 }
  0x3f   : > { %p27_p6 = scmp.eq.s32.totalorder %s26_s17, 0  ;;  %p37_p10 = scmp.eq.s32.totalorder %s2177_s21, 0 }
  0x40   : > { %p2592_p3 = scmp.eq.s32.totalorder %s2249_s22, 1  ;;  %p1896_p7 = scmp.lt.s32.totalorder %s2177_s21, 2 }
  0x41   : > { %s2360_s27 = scalar_select %p27_p6, %s2173_s20, %s29_s14  }
  0x42   : > { %p2354_p5 = por %p2592_p3, %p36_p13  ;;  %p38_p9 = por %p37_p10, %p36_p13 }
  0x43   : > { %s208_s30 = sand.u32 1, %s2173_s20   ;;  %s1674_s6 = sshll.u32 %s2177_s21, 8 }
  0x44   : > { %s2593_s23 = scalar_select %p2354_p5, 1, 0 }
  0x45   : > { %s1625_s7 = sshll.u32 %s208_s30, 4  ;;  %s2367_s10 = scalar_lea.hbm %s2579_s0, %s1674_s6 }
  0x46   : > { %s212_s11 = scalar_lea.vmem [#allocation2], %s1625_s7  ;;  %p2371_p11 = pnand %p1896_p7, %p38_p9 }
  0x47   : > { %s219_s28 = sshll.u32 %s212_s11, 4  ;;  %s2375_s13 = scalar_lea.sflag [#allocation3], %s208_s30  ;;  %s2369_s28 = int_to_ptr.vmem [resolvable:$true] %s219_s28 }
  0x48   : > { %s2077_s14 = scalar_lea.hbm %s2367_s10, 256  ;;  %p2079_p0 = pneg %p2371_p11 }
  0x49   : > { %p2078_p12 = scmp.ne.s32.totalorder %s2367_s10, %s2077_s14  ;;  %s2082_s6 = scalar_lea.hbm %s2579_s0, 512 }
  0x4a   : > { %p2083_p13 = scmp.lt.u32.totalorder %s2367_s10, %s2579_s0  ;;  %p2084_p6 = scmp.lt.u32.totalorder %s2082_s6, %s2077_s14 }
  0x4b   : > { %p2080_p1 = pnand %p2079_p0, %p2078_p12  ;;  %p2086_p3 = scmp.lt.u32.totalorder %s2077_s14, %s2367_s10 }
  0x4c   : > { %p2085_p10 = por %p2084_p6, %p2083_p13 }
  0x4d   : > { %p2081_p2 = pneg %p2080_p1 }
  0x4e   : > { %p2087_p7 = por %p2086_p3, %p2085_p10 }
  0x50   : > { %p2088_p9 = pnand %p2087_p7, %p2081_p2 }
  0x52   : > { %2091 = shalt.err (!%p2088_p9)
}
  0x53   : > { %s2092_s30 = scalar_lea.vmem %s2369_s28, 256  ;;  %s2183_s11 = smov [#allocation2]  }
  0x54   : > { %p2093_p12 = scmp.ne.s32.totalorder %s2369_s28, %s2092_s30  ;;  %s2097_s17 = sshll.u32 %s2183_s11, 4  ;;  %s2098_s17 = int_to_ptr.vmem [resolvable:$false] %s2097_s17 }
  0x55   : > { %s2099_s7 = scalar_lea.vmem %s2098_s17, 512  ;;  %p2100_p4 = scmp.lt.s32.totalorder %s2369_s28, %s2098_s17 }
  0x56   : > { %p2095_p1 = pnand %p2093_p12, %p2079_p0  ;;  %p2101_p13 = scmp.lt.s32.totalorder %s2099_s7, %s2092_s30 }
  0x58   : > { %p2096_p5 = pneg %p2095_p1  ;;  %p2102_p6 = por %p2101_p13, %p2100_p4 }
  0x5a   : > { %p2103_p10 = pnand %p2102_p6, %p2096_p5 }
  0x5c   : > { %2106 = shalt.err (!%p2103_p10)
}
  0x5d   : > { %1889 = dma.hbm_to_vmem [thread:$0]  (!%p2371_p11), %s2367_s10, 256, %s2369_s28, %s2375_s13, %s2181_s15, %s2181_s15, %s2182_s16  }
  0x5e   : > { %231 = sbr.rel (%p2268_p8) target bundleno = 2503 (0x9c7), region = 40  ;;  %s2409_s14 = sand.u32 (!%p2268_p8), 1, %s2169_s19  }
  0x5f   : > { %s1629_s6 = sshll.u32 (!%p2268_p8), %s2409_s14, 4  ;;  %s234_s8 = scalar_lea.sflag (!%p2268_p8), [#allocation3], %s2409_s14 }
  0x60   : > { %s237_s12 = scalar_lea.vmem (!%p2268_p8), [#allocation2], %s1629_s6  ;;  %p2595_p4 = scmp.ne.s32.totalorder (!%p2268_p8), %s2588_s24, 0 }
  0x65   : > { %2152 = dma.done.wait (%p2595_p4), %s234_s8, 256  }
  0x66   : > { %2154 = vsyncadd (%p2595_p4), %s234_s8, 4294967040  ;;  %p2596_p5 = scmp.eq.s32.totalorder %s2249_s22, 0 }
  0x68   : > { %2156 = dma.done.wait (%p2596_p5), [#allocation6], 1024   ;;  %p2597_p8 = pmov %p2596_p5 }
  0x69   : > { %vm285_vm0 = vcmask 261120   ;;  %v274_v0 = vld [vmem:[#allocation5] sm:$0xff]  ;;  %v275_v1 = vld [vmem:[#allocation5 + $0x8] sm:$0xff]  ;;  %v276_v2 = vld [vmem:[#allocation5 + $0x10] sm:$0xff]  ;;  %vm379_vm1 = vcmask 64512   ;;  %s2184_s15 = smov 96  }
  0x6a   : > { %2158 = vsyncadd (%p2597_p8), [#allocation6], 4294966272  ;;  %v1813_v3 = vpack.c.bf16 %v275_v1, %v274_v0  ;;  %v277_v4 = vld [vmem:[#allocation5 + $0x18] sm:$0xff]  ;;  %v272_v5 = vld [vmem:[%s237_s12] sm:$0xff]  ;;  %vm465_vm3 = vcmask 130048   ;;  %s2185_s16 = smov 64  }
  0x6b   : > { %v1817_v6 = vpack.c.bf16 %v277_v4, %v276_v2  ;;  %1734 = vmatprep.mubr.msk.f32.mxu0 %vm285_vm0, %v272_v5  ;;  %v273_v7 = vld [vmem:[%s237_s12 + $0x8] sm:$0xff]  ;;  %v1633_v8 = vld [vmem:[%s2581_s2] ss:$0 sm:$0xff]  ;;  %vm2437_vm2 = vmpackc.low %vm379_vm1, %vm379_vm1  ;;  %s2186_s10 = smov 88   ;;  %s2187_s28 = smov 120  }
  0x6c   : > { %1814 = vmatprep.subr.bf16.mxu0 %v1813_v3  ;;  %s2188_s13 = smov 80   ;;  %s2189_s9 = smov 112  }
  0x6d   : > { %1816 = vmatpush3.bf16.msra.mxu0 %v1813_v3  ;;  %s2190_s30 = smov 56   ;;  %s2191_s11 = smov 72  }
  0x6e   : > { %1818 = vmatprep.subr.bf16.mxu0 %v1817_v6  ;;  %s2192_s17 = smov 104   ;;  %s2193_s7 = smov 48  }
  0x6f   : > { %s2194_s8 = smov 40   ;;  %s271_s12 = scalar_lea.vmem [#allocation8], %s1629_s6 }
  0x70   : > { %s1528_s24 = sshll.u32 %s271_s12, 4  ;;  %s1515_s6 = scalar_lea.sflag [#allocation4], %s2409_s14  ;;  %s2528_s24 = int_to_ptr.vmem [resolvable:$true] %s1528_s24 }
  0x71   : > { %1820 = vmatpush3.bf16.msra.mxu0 %v1817_v6  ;;  %p2600_p0 = scmp.ne.s32.totalorder %s2593_s23, 0 }
  0x74   : > { %1735 = vmatmul.mubr.msk.f32.vlgmr.msra.gmra.mrb[0].mxu0 %vm285_vm0, %v273_v7 }
 0x147   : > { %v1736_v9 = vpop.f32.mrb[0].mxu0 }
 0x148   : > { %v364_v10 = vadd.f32 %v1736_v9, %v1633_v8  ;;  %v358_v11 = vpop.f32.mrb[1].mxu0 }
 0x149   : > { %v359_v12 = vadd.f32 %v1633_v8, %v358_v11 }
 0x14a   : > { %v2445_v20 = vmul.f32 0.35355338, %v364_v10 }
 0x14b   : > { %v2428_v13 = vpack.i.bf16 %v364_v10, %v359_v12  ;;  %v2430_v14 = vmul.f32 0.35355338, %v359_v12 }
 0x14d   : > { %1950 = vrot.lane.b32.xlu0 %v2428_v13, %s2184_s15  ;;  %1741 = vmatprep.mubr.msk.f32.mxu1 %vm379_vm1, %v2430_v14 }
 0x1bf   : > { %v1951_v15 = vpop.permute.xlu0 %1950 }
 0x1c0   : > { %v1953_v16 = vunpack.i.h.bf16 %v1951_v15  ;;  %v1952_v17 = vunpack.i.l.bf16 %v1951_v15 }
 0x1c2   : > { %v1821_v19 = vpack.c.bf16 %v1953_v16, %v1952_v17 }
 0x1c4   : > { %1823 = vmatprep.subr.msk.bf16.mxu1 %vm2437_vm2, %v1821_v19 }
 0x1c5   : > { %1826 = vmatpush3.bf16.xpose.msk.msra.mxu1 %vm2437_vm2, %v1821_v19 }
 0x1cc   : > { %1742 = vmatmul.mubr.msk.f32.vlgmr.msra.gmra.mrb[0].mxu1 %vm379_vm1, %v2445_v20 }
 0x29f   : > { %v1743_v21 = vpop.f32.mrb[0].mxu1 }
 0x2a0   : > { %v456_v22 = vpop.f32.mrb[1].mxu1  ;;  %v469_v23 = vsel %vm465_vm3, %v1743_v21, -inf }
 0x2a1   : > { %470 = vmax.xlane.f32.xlu1 %v469_v23  ;;  %v466_v24 = vsel %vm465_vm3, %v456_v22, -inf }
 0x2a2   : > { %467 = vmax.xlane.f32.xlu0 %v466_v24 }
 0x2b2   : > { %1955 = vrot.lane.b32.xlu1 %v2428_v13, %s2185_s16  ;;  %s1675_s16 = sshll.u32 %s2249_s22, 8  ;;  %s2107_s22 = scalar_lea.vmem %s2528_s24, 256 }
 0x2b3   : > { %p2108_p11 = scmp.ne.s32.totalorder %s2528_s24, %s2107_s22 }
 0x2b5   : > { %p2109_p2 = pnand %p2108_p11, %p2600_p0 }
 0x2b6   : > { %1960 = vrot.lane.b32.xlu1 %v2428_v13, %s2186_s10 }
 0x2b7   : > { %p2110_p3 = pneg %p2109_p2 }
 0x2b8   : > { %577 = vrot.lane.b32.xlu0 %v2445_v20, %s2187_s28 }
 0x32e   : > { %v471_v25 = vpop.xlane.xlu1 %470 }
 0x32f   : > { %v473_v26 = vsub.f32 %v1743_v21, %v471_v25  ;;  %v468_v27 = vpop.xlane.xlu0 %467 }
 0x330   : > { %v472_v28 = vsub.f32 %v456_v22, %v468_v27 }
 0x331   : > { %v476_v29 = vmul.f32 1.442695, %v473_v26 }
 0x332   : > { %v474_v30 = vmul.f32 1.442695, %v472_v28  ;;  %v1956_v31 = vpop.permute.xlu1 %1955 }
 0x333   : > { %1989 = vpow2.f32 %v476_v29  ;;  %v1958_v32 = vunpack.i.h.bf16 %v1956_v31  ;;  %v1957_v33 = vunpack.i.l.bf16 %v1956_v31  ;;  %v578_v54 = vpop.permute.xlu0 %577 }
 0x334   : > { %1991 = vpow2.f32 %v474_v30 }
 0x335   : > { %v1827_v34 = vpack.c.bf16 %v1958_v32, %v1957_v33 }
 0x336   : > { %v1961_v35 = vpop.permute.xlu1 %1960 }
 0x337   : > { %v1963_v36 = vunpack.i.h.bf16 %v1961_v35  ;;  %v1962_v37 = vunpack.i.l.bf16 %v1961_v35  ;;  %1828 = vmatprep.subr.bf16.mxu1 %v1827_v34 }
 0x338   : > { %1830 = vmatpush3.bf16.msra.mxu1 %v1827_v34 }
 0x339   : > { %v1831_v38 = vpack.c.bf16 %v1963_v36, %v1962_v37 }
 0x33b   : > { %1833 = vmatprep.subr.msk.bf16.mxu1 %vm2437_vm2, %v1831_v38 }
 0x33d   : > { %v1990_v39 = vpop.eup %1989 }
 0x33e   : > { %v481_v40 = vsel %vm465_vm3, %v1990_v39, 0.0  ;;  %v1992_v41 = vpop.eup %1991 }
 0x33f   : > { %482 = vadd.xlane.f32.xlu1 %v481_v40  ;;  %v478_v42 = vsel %vm465_vm3, %v1992_v41, 0.0  ;;  %v367_v40 = vld [vmem:[#allocation7] sm:$0xff] }
 0x343   : > { %479 = vadd.xlane.f32.xlu1 %v478_v42 }
 0x354   : > { %575 = vrot.lane.b32.xlu1 %v2430_v14, %s2187_s28 }
 0x358   : > { %1965 = vrot.lane.b32.xlu1 %v2428_v13, %s2188_s13  ;;  %s2533_s13 = scalar_lea.hbm %s2584_s5, %s1675_s16 }
 0x35c   : > { %937 = vrot.lane.b32.xlu1 %v2430_v14, %s2189_s9 }
 0x360   : > { %939 = vrot.lane.b32.xlu1 %v2445_v20, %s2189_s9  ;;  %s2195_s9 = smov [#allocation8]  }
 0x3cc   : > { %v483_v43 = vpop.xlane.xlu1 %482 }
 0x3cd   : > { %1993 = vrcp.f32 %v483_v43 }
 0x3d0   : > { %v480_v44 = vpop.xlane.xlu1 %479 }
 0x3d1   : > { %1995 = vrcp.f32 %v480_v44 }
 0x3d4   : > { %v576_v45 = vpop.permute.xlu1 %575 }
 0x3d7   : > { %v1994_v47 = vpop.eup %1993 }
 0x3d8   : > { %v1966_v46 = vpop.permute.xlu1 %1965  ;;  %v487_v52 = vmul.f32 %v1994_v47, %v1990_v39  ;;  %v368_v39 = vld [vmem:[#allocation7 + $0x8] sm:$0xff] }
 0x3d9   : > { %v1968_v49 = vunpack.i.h.bf16 %v1966_v46  ;;  %v1967_v50 = vunpack.i.l.bf16 %v1966_v46 }
 0x3db   : > { %v1996_v48 = vpop.eup %1995  ;;  %v1841_v53 = vpack.c.bf16 %v1968_v49, %v1967_v50 }
 0x3dc   : > { %v486_v51 = vmul.f32 %v1996_v48, %v1992_v41  ;;  %v938_v55 = vpop.permute.xlu1 %937 }
 0x3de   : > { %1748 = vmatprep.mubr.msk.f32.mxu1 %vm465_vm3, %v486_v51 }
 0x3df   : > { %1749 = vmatmul.mubr.msk.f32.vlgmr.msra.gmra.mrb[2].mxu1 %vm465_vm3, %v487_v52 }
 0x3e0   : > { %1836 = vmatpush3.bf16.xpose.msk.msra.mxu1 %vm2437_vm2, %v1831_v38  ;;  %1755 = vmatprep.mubr.msk.f32.mxu1 %vm379_vm1, %v576_v45  ;;  %v940_v56 = vpop.permute.xlu1 %939 }
 0x3e1   : > { %1843 = vmatprep.subr.msk.bf16.mxu1 %vm2437_vm2, %v1841_v53 }
 0x3e7   : > { %1756 = vmatmul.mubr.msk.f32.vlgmr.msra.gmra.mrb[4].mxu1 %vm379_vm1, %v578_v54 }
 0x3e8   : > { %1846 = vmatpush3.bf16.xpose.msk.msra.mxu1 %vm2437_vm2, %v1841_v53  ;;  %1779 = vmatprep.mubr.msk.f32.mxu1 %vm379_vm1, %v938_v55 }
 0x3ef   : > { %1780 = vmatmul.mubr.msk.f32.vlgmr.msra.gmra.mrb[6].mxu1 %vm379_vm1, %v940_v56 }
 0x4b2   : > { %v2474_v57 = vpop.f32.mrb[2].mxu1 }
 0x4b3   : > { %v2476_v58 = vpop.f32.mrb[3].mxu1 }
 0x4ba   : > { %v1757_v59 = vpop.f32.mrb[4].mxu1 }
 0x4bb   : > { %v657_v60 = vpop.f32.mrb[5].mxu1  ;;  %v669_v61 = vsel %vm465_vm3, %v1757_v59, -inf }
 0x4bc   : > { %670 = vmax.xlane.f32.xlu0 %v669_v61  ;;  %v666_v62 = vsel %vm465_vm3, %v657_v60, -inf }
 0x4bd   : > { %667 = vmax.xlane.f32.xlu1 %v666_v62 }
 0x4c2   : > { %v2480_v63 = vpop.f32.mrb[6].mxu1 }
 0x4c3   : > { %v1019_v0 = vpop.f32.mrb[7].mxu1  ;;  %v1031_v12 = vsel %vm465_vm3, %v2480_v63, -inf }
 0x4c4   : > { %v1028_v11 = vsel %vm465_vm3, %v1019_v0, -inf }
 0x549   : > { %v671_v1 = vpop.xlane.xlu0 %670 }
 0x54a   : > { %v673_v2 = vsub.f32 %v1757_v59, %v671_v1  ;;  %v668_v3 = vpop.xlane.xlu1 %667  ;;  %v369_v59 = vld [vmem:[#allocation7 + $0x10] sm:$0xff] }
 0x54b   : > { %v672_v4 = vsub.f32 %v657_v60, %v668_v3 }
 0x54c   : > { %v676_v5 = vmul.f32 1.442695, %v673_v2 }
 0x54d   : > { %v674_v6 = vmul.f32 1.442695, %v672_v4 }
 0x54e   : > { %1997 = vpow2.f32 %v676_v5 }
 0x54f   : > { %1999 = vpow2.f32 %v674_v6 }
 0x558   : > { %v1998_v7 = vpop.eup %1997 }
 0x559   : > { %v2000_v8 = vpop.eup %1999  ;;  %v681_v9 = vsel %vm465_vm3, %v1998_v7, 0.0 }
 0x55a   : > { %682 = vadd.xlane.f32.xlu0 %v681_v9  ;;  %v678_v10 = vsel %vm465_vm3, %v2000_v8, 0.0 }
 0x55b   : > { %679 = vadd.xlane.f32.xlu1 %v678_v10  ;;  %v370_v10 = vld [vmem:[#allocation7 + $0x18] sm:$0xff] }
 0x56c   : > { %1970 = vrot.lane.b32.xlu1 %v2428_v13, %s2190_s30  ;;  %s2111_s30 = sshll.u32 %s2195_s9, 4  ;;  %s2112_s30 = int_to_ptr.vmem [resolvable:$false] %s2111_s30 }
 0x56d   : > { %p2114_p7 = scmp.lt.s32.totalorder %s2528_s24, %s2112_s30 }
 0x570   : > { %1975 = vrot.lane.b32.xlu0 %v2428_v13, %s2191_s11  ;;  %1220 = vrot.lane.b32.xlu1 %v2430_v14, %s2192_s17  ;;  %s2113_s11 = scalar_lea.vmem %s2112_s30, 512 }
 0x571   : > { %p2115_p9 = scmp.lt.s32.totalorder %s2113_s11, %s2107_s22 }
 0x573   : > { %p2116_p12 = por %p2115_p9, %p2114_p7 }
 0x574   : > { %1222 = vrot.lane.b32.xlu1 %v2445_v20, %s2192_s17 }
 0x575   : > { %p2117_p1 = pnand %p2116_p12, %p2110_p3 }
 0x58f   : > { %1029 = vmax.xlane.f32.xlu0 %v1028_v11 }
 0x598   : > { %1032 = vmax.xlane.f32.xlu1 %v1031_v12 }
 0x5a9   : > { %1980 = vrot.lane.b32.xlu1 %v2428_v13, %s2193_s7 }
 0x5ad   : > { %1985 = vrot.lane.b32.xlu1 %v2428_v13, %s2194_s8 }
 0x5e7   : > { %v683_v15 = vpop.xlane.xlu0 %682 }
 0x5e8   : > { %2001 = vrcp.f32 %v683_v15  ;;  %v680_v16 = vpop.xlane.xlu1 %679 }
 0x5e9   : > { %2003 = vrcp.f32 %v680_v16 }
 0x5eb   : > { %v1976_v14 = vpop.permute.xlu0 %1975 }
 0x5ec   : > { %v1978_v17 = vunpack.i.h.bf16 %v1976_v14  ;;  %v1977_v19 = vunpack.i.l.bf16 %v1976_v14  ;;  %v1971_v20 = vpop.permute.xlu1 %1970 }
 0x5ed   : > { %v1973_v21 = vunpack.i.h.bf16 %v1971_v20  ;;  %v1972_v22 = vunpack.i.l.bf16 %v1971_v20 }
 0x5ee   : > { %v1851_v23 = vpack.c.bf16 %v1978_v17, %v1977_v19 }
 0x5ef   : > { %v1837_v24 = vpack.c.bf16 %v1973_v21, %v1972_v22  ;;  %v1668_v21 = vld [vmem:[%s2583_s4] ss:$0 sm:$0xff] }
 0x5f0   : > { %1853 = vmatprep.subr.msk.bf16.mxu1 %vm2437_vm2, %v1851_v23  ;;  %v1221_v25 = vpop.permute.xlu1 %1220 }
 0x5f1   : > { %1838 = vmatprep.subr.bf16.mxu0 %v1837_v24  ;;  %1856 = vmatpush3.bf16.xpose.msk.msra.mxu1 %vm2437_vm2, %v1851_v23 }
 0x5f2   : > { %v2002_v13 = vpop.eup %2001  ;;  %1798 = vmatprep.mubr.msk.f32.mxu1 %vm379_vm1, %v1221_v25  ;;  %1840 = vmatpush3.bf16.msra.mxu0 %v1837_v24 }
 0x5f3   : > { %v2004_v26 = vpop.eup %2003  ;;  %v687_v28 = vmul.f32 %v2002_v13, %v1998_v7  ;;  %1765 = vmatprep.subr.mxu0 %v368_v39 }
 0x5f4   : > { %v686_v27 = vmul.f32 %v2004_v26, %v2000_v8  ;;  %v1223_v29 = vpop.permute.xlu1 %1222 }
 0x5f6   : > { %1762 = vmatprep.mubr.msk.f32.mxu0 %vm465_vm3, %v686_v27 }
 0x5f7   : > { %1763 = vmatmul.mubr.msk.f32.vlgmr.msra.gmra.mrb[2].mxu0 %vm465_vm3, %v687_v28 }
 0x5f8   : > { %1799 = vmatmul.mubr.msk.f32.vlgmr.msra.gmra.mrb[8].mxu1 %vm379_vm1, %v1223_v29  ;;  %1766 = vmatpush3.msra.mxu0 %v368_v39 }
 0x5f9   : > { %1770 = vmatprep.subr.mxu0 %v367_v40 }
 0x61c   : > { %v1030_v30 = vpop.xlane.xlu0 %1029 }
 0x61d   : > { %v1034_v31 = vsub.f32 %v1019_v0, %v1030_v30 }
 0x61f   : > { %v1036_v32 = vmul.f32 1.442695, %v1034_v31 }
 0x621   : > { %2005 = vpow2.f32 %v1036_v32 }
 0x625   : > { %v1033_v18 = vpop.xlane.xlu1 %1032 }
 0x626   : > { %v1035_v33 = vsub.f32 %v2480_v63, %v1033_v18 }
 0x628   : > { %v1038_v34 = vmul.f32 1.442695, %v1035_v33 }
 0x629   : > { %v1981_v42 = vpop.permute.xlu1 %1980 }
 0x62a   : > { %2007 = vpow2.f32 %v1038_v34  ;;  %v1983_v44 = vunpack.i.h.bf16 %v1981_v42  ;;  %v1982_v45 = vunpack.i.l.bf16 %v1981_v42 }
 0x62b   : > { %v2006_v35 = vpop.eup %2005 }
 0x62c   : > { %v1040_v36 = vsel %vm465_vm3, %v2006_v35, 0.0  ;;  %v1847_v50 = vpack.c.bf16 %v1983_v44, %v1982_v45 }
 0x62d   : > { %1041 = vadd.xlane.f32.xlu0 %v1040_v36  ;;  %v1986_v54 = vpop.permute.xlu1 %1985 }
 0x62e   : > { %v1988_v60 = vunpack.i.h.bf16 %v1986_v54  ;;  %v1987_v61 = vunpack.i.l.bf16 %v1986_v54 }
 0x634   : > { %v2008_v37 = vpop.eup %2007 }
 0x635   : > { %v1043_v38 = vsel %vm465_vm3, %v2008_v37, 0.0 }
 0x636   : > { %1044 = vadd.xlane.f32.xlu0 %v1043_v38 }
 0x6ba   : > { %v1042_v41 = vpop.xlane.xlu0 %1041 }
 0x6bb   : > { %2009 = vrcp.f32 %v1042_v41 }
 0x6c3   : > { %v1045_v43 = vpop.xlane.xlu0 %1044 }
 0x6c4   : > { %2011 = vrcp.f32 %v1045_v43 }
 0x6c5   : > { %v2010_v52 = vpop.eup %2009 }
 0x6c6   : > { %v1048_v56 = vmul.f32 %v2010_v52, %v2006_v35 }
 0x6ca   : > { %v1764_v46 = vpop.f32.mrb[2].mxu0 }
 0x6cb   : > { %v766_v47 = vpop.f32.mrb[3].mxu0  ;;  %v1800_v48 = vpop.f32.mrb[8].mxu1 }
 0x6cc   : > { %1767 = vmatprep.mubr.msk.f32.mxu0 %vm379_vm1, %v766_v47  ;;  %v1302_v49 = vpop.f32.mrb[9].mxu1  ;;  %v1314_v53 = vsel %vm465_vm3, %v1800_v48, -inf }
 0x6cd   : > { %1768 = vmatmul.mubr.msk.f32.vlgmr.msra.gmra.mrb[4].mxu0 %vm379_vm1, %v1764_v46  ;;  %v1311_v51 = vsel %vm465_vm3, %v1302_v49, -inf }
 0x6ce   : > { %1771 = vmatpush3.msra.mxu0 %v367_v40  ;;  %1312 = vmax.xlane.f32.xlu0 %v1311_v51  ;;  %v2012_v55 = vpop.eup %2011 }
 0x6cf   : > { %1772 = vmatprep.mubr.msk.f32.mxu0 %vm379_vm1, %v2476_v58  ;;  %1848 = vmatprep.subr.bf16.mxu0 %v1847_v50  ;;  %v1049_v62 = vmul.f32 %v2012_v55, %v2008_v37  ;;  %v1857_v58 = vpack.c.bf16 %v1988_v60, %v1987_v61 }
 0x6d2   : > { %1315 = vmax.xlane.f32.xlu0 %v1314_v53 }
 0x6d5   : > { %1773 = vmatmul.mubr.msk.f32.vlgmr.msra.gmra.mrb[4].mxu0 %vm379_vm1, %v2474_v57 }
 0x6d6   : > { %1850 = vmatpush3.bf16.msra.mxu0 %v1847_v50  ;;  %1786 = vmatprep.mubr.msk.f32.mxu0 %vm465_vm3, %v1048_v56 }
 0x6d7   : > { %1789 = vmatprep.subr.mxu0 %v369_v59 }
 0x6d9   : > { %1787 = vmatmul.mubr.msk.f32.vlgmr.msra.gmra.mrb[6].mxu0 %vm465_vm3, %v1049_v62 }
 0x6da   : > { %1790 = vmatpush3.msra.mxu0 %v369_v59 }
 0x6db   : > { %1858 = vmatprep.subr.bf16.mxu0 %v1857_v58 }
 0x75b   : > { %v1313_v63 = vpop.xlane.xlu0 %1312 }
 0x75c   : > { %v1317_v0 = vsub.f32 %v1302_v49, %v1313_v63 }
 0x75e   : > { %v1319_v1 = vmul.f32 1.442695, %v1317_v0 }
 0x75f   : > { %v1316_v2 = vpop.xlane.xlu0 %1315 }
 0x760   : > { %2013 = vpow2.f32 %v1319_v1  ;;  %v1318_v3 = vsub.f32 %v1800_v48, %v1316_v2 }
 0x762   : > { %v1321_v4 = vmul.f32 1.442695, %v1318_v3 }
 0x764   : > { %2015 = vpow2.f32 %v1321_v4 }
 0x76a   : > { %v2014_v5 = vpop.eup %2013 }
 0x76b   : > { %v1323_v57 = vsel %vm465_vm3, %v2014_v5, 0.0 }
 0x76c   : > { %1324 = vadd.xlane.f32.xlu0 %v1323_v57 }
 0x76e   : > { %v2016_v6 = vpop.eup %2015 }
 0x76f   : > { %v1326_v7 = vsel %vm465_vm3, %v2016_v6, 0.0 }
 0x770   : > { %1327 = vadd.xlane.f32.xlu0 %v1326_v7 }
 0x7ac   : > { %v1788_v8 = vpop.f32.mrb[6].mxu0 }
 0x7ad   : > { %v1128_v9 = vpop.f32.mrb[7].mxu0 }
 0x7ae   : > { %1791 = vmatprep.mubr.msk.f32.mxu0 %vm379_vm1, %v1128_v9 }
 0x7af   : > { %1792 = vmatmul.mubr.msk.f32.vlgmr.msra.gmra.mrb[4].mxu0 %vm379_vm1, %v1788_v8 }
 0x7b0   : > { %1860 = vmatpush3.bf16.msra.mxu0 %v1857_v58 }
 0x7b1   : > { %1808 = vmatprep.subr.mxu0 %v370_v10 }
 0x7f9   : > { %v1325_v11 = vpop.xlane.xlu0 %1324 }
 0x7fa   : > { %2017 = vrcp.f32 %v1325_v11 }
 0x7fd   : > { %v1328_v12 = vpop.xlane.xlu0 %1327 }
 0x7fe   : > { %2019 = vrcp.f32 %v1328_v12 }
 0x804   : > { %v2018_v15 = vpop.eup %2017 }
 0x805   : > { %v1331_v16 = vmul.f32 %v2018_v15, %v2014_v5 }
 0x807   : > { %1805 = vmatprep.mubr.msk.f32.mxu0 %vm465_vm3, %v1331_v16 }
 0x808   : > { %v2020_v14 = vpop.eup %2019 }
 0x809   : > { %v1332_v17 = vmul.f32 %v2020_v14, %v2016_v6 }
 0x80b   : > { %1806 = vmatmul.mubr.msk.f32.vlgmr.msra.gmra.mrb[8].mxu0 %vm465_vm3, %v1332_v17 }
 0x80c   : > { %1809 = vmatpush3.msra.mxu0 %v370_v10 }
 0x8de   : > { %v1807_v19 = vpop.f32.mrb[8].mxu0 }
 0x8df   : > { %v1411_v20 = vpop.f32.mrb[9].mxu0 }
 0x8e0   : > { %1810 = vmatprep.mubr.msk.f32.mxu0 %vm379_vm1, %v1411_v20 }
 0x8e1   : > { %1811 = vmatmul.mubr.msk.f32.vlgmr.msra.gmra.mrb[4].mxu0 %vm379_vm1, %v1807_v19 }
 0x9b4   : > { %v1812_v22 = vpop.f32.mrb[4].mxu0 }
 0x9b5   : > { %v1511_v23 = vadd.f32 %v1812_v22, %v1668_v21  ;;  %v1492_v24 = vpop.f32.mrb[5].mxu0 }
 0x9b6   : > { %v1510_v25 = vadd.f32 %v1668_v21, %v1492_v24 }
 0x9b7   : > { %1513 = vst.msk [vmem:[%s271_s12 + $0x8] sm:$0xff] %vm285_vm0, %v1511_v23 }
 0x9b8   : > { %1512 = vst.msk [vmem:[%s271_s12] sm:$0xff] %vm285_vm0, %v1510_v25 }
 0x9b9   : > { %2120 = shalt.err (!%p2117_p1)
}
 0x9ba   : > { %s2121_s17 = scalar_lea.hbm %s2533_s13, 256  ;;  %s2125_s12 = scalar_lea.hbm %s2584_s5, 512 }
 0x9bb   : > { %p2122_p13 = scmp.ne.s32.totalorder %s2533_s13, %s2121_s17  ;;  %p2126_p4 = scmp.lt.u32.totalorder %s2533_s13, %s2584_s5 }
 0x9bc   : > { %p2127_p5 = scmp.lt.u32.totalorder %s2125_s12, %s2121_s17  ;;  %p2129_p11 = scmp.lt.u32.totalorder %s2121_s17, %s2533_s13 }
 0x9bd   : > { %p2123_p6 = pnand %p2122_p13, %p2600_p0 }
 0x9be   : > { %p2128_p8 = por %p2127_p5, %p2126_p4 }
 0x9bf   : > { %p2124_p10 = pneg %p2123_p6 }
 0x9c0   : > { %p2130_p2 = por %p2129_p11, %p2128_p8 }
 0x9c2   : > { %p2131_p3 = pnand %p2130_p2, %p2124_p10 }
 0x9c4   : > { %2134 = shalt.err (!%p2131_p3)
}
 0x9c5   : > { %s2196_s16 = smov 128   ;;  %s2197_s10 = smov 8  }
 0x9c6   : > { %1877 = dma.vmem_to_hbm [thread:$0]  (%p2600_p0), %s2528_s24, 256, %s2533_s13, %s1515_s6, %s2196_s16, %s2196_s16, %s2197_s10  }
 0x9c7 PF: > { %s1543_s28 = sand.u32 1, %s2165_s18   ;;  %p2601_p7 = scmp.ne.s32.totalorder %s2589_s25, 0 }
 0x9c8   : > { %p2602_p9 = scmp.ge.s32.totalorder %s2177_s21, 2  ;;  %s1544_s22 = scalar_lea.sflag [#allocation4], %s1543_s28 }
 0x9ca   : > { %p1891_p12 = pnand %p2602_p9, %p2601_p7 }
 0x9cc   : > { %2160 = dma.done.wait (!%p1891_p12), %s1544_s22, 256  }
 0x9cd   : > { %2162 = vsyncadd (!%p1891_p12), %s1544_s22, 4294967040  ;;  %p19_p1 = scmp.ge.s32.totalorder %s2344_s29, 4   ;;  %s2603_s18 = smov %s2169_s19 }
 0x9ce   : > { %s2604_s19 = smov %s2173_s20  ;;  %s2605_s20 = smov %s2360_s27 }
 0x9cf   : > { %s2606_s21 = smov %s2344_s29  ;;  %21 = sbr.rel (!%p19_p1) target bundleno = 6 (0x6), region = 93 }
 0x9d6   :  { %1549 = vsyncpa [#allocation3], 1 }
 0x9d7   :  { %1551 = vsyncpa [#allocation3 + $0x1], 1 }
 0x9d8   :  { %1552 = vsyncpa [#allocation6], 1 }
 0x9d9   :  { %1553 = vsyncpa [#allocation4], 1 }
 0x9da   :  { %1555 = vsyncpa [#allocation4 + $0x1], 1 }

</bundles_post_ra>
